<compile_context>
chip_gen: v6e
topology: v6e:2x2x1
jax: 0.10.0
libtpu: 0.0.40
codegen_flags: <defaults>
</compile_context>

<pallas_src>
import functools

import jax
import jax.numpy as jnp
from jax.experimental import pallas as pl
from jax.experimental.pallas import tpu as pltpu


def _round_up(x, m):
    return (x + m - 1) // m * m


def _leaky_relu(v):
    # nn.LeakyReLU() default negative_slope = 0.01
    return jnp.where(v >= 0, v, 0.01 * v)


# --------------------------------------------------------------------------
# Kernel
# --------------------------------------------------------------------------
def vae_kernel(x_ref, eps_ref,
               ew1_ref, eb1_ref, ew2_ref, eb2_ref,
               ew3m_ref, eb3m_ref, ew3v_ref, eb3v_ref,
               dw1_ref, db1_ref, dw2_ref, db2_ref, dw3_ref, db3_ref,
               mu_prime_ref, mu_ref, logvar_ref):
    mm = ew1_ref.dtype          # matmul operand dtype (f32 or bf16)
    x = x_ref[...]

    # ---------------- encoder ----------------
    h = _leaky_relu(jnp.dot(x.astype(mm), ew1_ref[...],
                            preferred_element_type=jnp.float32) + eb1_ref[...])
    h = _leaky_relu(jnp.dot(h.astype(mm), ew2_ref[...],
                            preferred_element_type=jnp.float32) + eb2_ref[...])
    # Split head: two lane-aligned dots, no in-kernel lane slicing.
    hm = h.astype(mm)
    mu = jnp.dot(hm, ew3m_ref[...],
                 preferred_element_type=jnp.float32) + eb3m_ref[...]
    log_var = jnp.dot(hm, ew3v_ref[...],
                      preferred_element_type=jnp.float32) + eb3v_ref[...]
    mu_ref[...] = mu
    logvar_ref[...] = log_var

    # ---------------- reparameterization ----------------
    # z = mu + eps * std,  std = exp(0.5 * log_var)  (one EUP op, no overflow)
    z = mu + eps_ref[...] * jnp.exp(0.5 * log_var)

    # ---------------- decoder ----------------
    d = _leaky_relu(jnp.dot(z.astype(mm), dw1_ref[...],
                            preferred_element_type=jnp.float32) + db1_ref[...])
    d = _leaky_relu(jnp.dot(d.astype(mm), dw2_ref[...],
                            preferred_element_type=jnp.float32) + db2_ref[...])
    d = jnp.dot(d.astype(mm), dw3_ref[...],
                preferred_element_type=jnp.float32) + db3_ref[...]
    mu_prime_ref[...] = jax.nn.sigmoid(d)


# --------------------------------------------------------------------------
# One-time parameter preparation (hoisted out of the forward pass)
# --------------------------------------------------------------------------
def prepare_params(params, *, use_bf16_matmul=False):
    """Pad weights to lane-dense multiples of 128, split the encoder head into
    (mu, log_var) halves, and optionally cast matmul weights to bf16.
    Run ONCE; the results live in HBM as already lane-dense slabs."""
    F = params["ew1"].shape[0]
    L = params["dw1"].shape[0]
    Fp = _round_up(F, 128)
    Lp = _round_up(L, 128)
    mm_dtype = jnp.bfloat16 if use_bf16_matmul else jnp.float32

    def pad_w(a, rows, cols):
        return jnp.pad(a, ((0, rows - a.shape[0]),
                           (0, cols - a.shape[1]))).astype(mm_dtype)

    def pad_b(a, cols):
        return jnp.pad(a, ((0, 0), (0, cols - a.shape[1]))).astype(jnp.float32)

    ew3m, ew3v = params["ew3"][:, :L], params["ew3"][:, L:]
    eb3m, eb3v = params["eb3"][:, :L], params["eb3"][:, L:]

    weights = (
        pad_w(params["ew1"], Fp, Fp), pad_b(params["eb1"], Fp),
        pad_w(params["ew2"], Fp, Fp), pad_b(params["eb2"], Fp),
        pad_w(ew3m, Fp, Lp),          pad_b(eb3m, Lp),
        pad_w(ew3v, Fp, Lp),          pad_b(eb3v, Lp),
        pad_w(params["dw1"], Lp, Fp), pad_b(params["db1"], Fp),
        pad_w(params["dw2"], Fp, Fp), pad_b(params["db2"], Fp),
        pad_w(params["dw3"], Fp, Fp), pad_b(params["db3"], Fp),
    )
    return tuple(jax.device_put(w) for w in weights)


def _resident_weight_spec(shape):
    """Constant index_map -> VMEM-resident across grid steps; single buffer."""
    idx = lambda i: (0, 0)
    try:
        return pl.BlockSpec(shape, idx, pipeline_mode=pl.Buffered(1))
    except TypeError:
        # Older jax without pipeline_mode kwarg: fall back to default buffering.
        return pl.BlockSpec(shape, idx)


# --------------------------------------------------------------------------
# Forward pass wrapper
# --------------------------------------------------------------------------
@functools.partial(jax.jit, static_argnames=("tile_b",))
def vae_forward(x, eps, prepared, *, tile_b=1024):
    """x: (B, F) f32, eps: (B, L) f32 ~ N(0,1), prepared: prepare_params(...).

    Returns (mu_prime (B, F), mu (B, L), log_var (B, L))."""
    B, F = x.shape
    L = eps.shape[1]
    Fp = prepared[0].shape[0]   # padded feature dim (ew1: (Fp, Fp))
    Lp = prepared[8].shape[0]   # padded latent dim  (dw1: (Lp, Fp))

    # Batch tile: large tiles amortize the ~0.35us/step grid overhead; must be
    # a multiple of 8 (sublane).  If the whole batch fits in one tile but is
    # large enough to split, use >= 2 programs so v7x can shard the "parallel"
    # axis across its two TensorCores (neutral on 1-TC v5e/v6e).
    tb = _round_up(max(8, min(tile_b, B)), 8)
    if tb >= B and B >= 16:
        tb = _round_up((B + 1) // 2, 8)
    Bp = _round_up(B, tb)
    num_tiles = Bp // tb

    x_p = jnp.pad(x, ((0, Bp - B), (0, Fp - F)))
    eps_p = jnp.pad(eps, ((0, Bp - B), (0, Lp - L)))

    # Activation / output tiles: double-buffered by the pipeline.
    x_spec = pl.BlockSpec((tb, Fp), lambda i: (i, 0))
    eps_spec = pl.BlockSpec((tb, Lp), lambda i: (i, 0))
    # Weights: VMEM-resident, single-buffered.
    w_specs = [_resident_weight_spec(w.shape) for w in prepared]

    out_shapes = (
        jax.ShapeDtypeStruct((Bp, Fp), jnp.float32),   # mu_prime (padded)
        jax.ShapeDtypeStruct((Bp, Lp), jnp.float32),   # mu       (padded)
        jax.ShapeDtypeStruct((Bp, Lp), jnp.float32),   # log_var  (padded)
    )
    out_specs = (
        pl.BlockSpec((tb, Fp), lambda i: (i, 0)),
        pl.BlockSpec((tb, Lp), lambda i: (i, 0)),
        pl.BlockSpec((tb, Lp), lambda i: (i, 0)),
    )

    # VMEM budget from actual buffer sizes: weights x1 (Buffered(1)),
    # activation + output tiles x2 (double-buffered), plus headroom; capped at
    # ~80% of physical VMEM (64 MiB on v7x, 128 MiB on v5e/v6e).
    weight_bytes = sum(int(w.size) * w.dtype.itemsize for w in prepared)
    tile_bytes = 2 * tb * (Fp + Lp) * 4 + 2 * tb * (Fp + 2 * Lp) * 4
    try:
        phys_vmem = int(pltpu.get_tpu_info().vmem_capacity_bytes)
    except Exception:
        phys_vmem = 64 * 1024 * 1024
    vmem_limit = min(int(phys_vmem * 0.8),
                     max(16 * 1024 * 1024,
                         int(1.25 * (weight_bytes + tile_bytes)) + (2 << 20)))

    # TODO(synk): for very large F on v7x (where bf16 + Buffered(1) weights no
    # longer fit 64 MiB) add a K/N grid axis with a pl.when-guarded accumulator.
    mu_prime_p, mu_p, logvar_p = pl.pallas_call(
        vae_kernel,
        out_shape=out_shapes,
        grid=(num_tiles,),
        in_specs=[x_spec, eps_spec] + w_specs,
        out_specs=out_specs,
        compiler_params=pltpu.CompilerParams(
            dimension_semantics=("parallel",),
            vmem_limit_bytes=vmem_limit,
        ),
    )(x_p, eps_p, *prepared)

    # Strip padding in the wrapper.
    return mu_prime_p[:B, :F], mu_p[:B, :L], logvar_p[:B, :L]


# --------------------------------------------------------------------------
# Init + pure-JAX reference
# --------------------------------------------------------------------------
def init_params(key, in_features, latent_size):
    """PyTorch-style uniform(-1/sqrt(fan_in), 1/sqrt(fan_in)) init.
    Weights stored transposed: (fan_in, fan_out). Biases as (1, fan_out)."""
    def linear(key, fan_in, fan_out):
        kw, kb = jax.random.split(key)
        bound = 1.0 / jnp.sqrt(jnp.float32(fan_in))
        w = jax.random.uniform(kw, (fan_in, fan_out), jnp.float32, -bound, bound)
        b = jax.random.uniform(kb, (1, fan_out), jnp.float32, -bound, bound)
        return w, b

    keys = jax.random.split(key, 6)
    F, L = in_features, latent_size
    ew1, eb1 = linear(keys[0], F, F)
    ew2, eb2 = linear(keys[1], F, F)
    ew3, eb3 = linear(keys[2], F, 2 * L)
    dw1, db1 = linear(keys[3], L, F)
    dw2, db2 = linear(keys[4], F, F)
    dw3, db3 = linear(keys[5], F, F)
    return dict(ew1=ew1, eb1=eb1, ew2=ew2, eb2=eb2, ew3=ew3, eb3=eb3,
                dw1=dw1, db1=db1, dw2=dw2, db2=db2, dw3=dw3, db3=db3)


def vae_reference(x, eps, p):
    """Pure-JAX reference mirroring the PyTorch forward."""
    leaky = lambda v: jnp.where(v >= 0, v, 0.01 * v)
    h = leaky(x @ p["ew1"] + p["eb1"])
    h = leaky(h @ p["ew2"] + p["eb2"])
    out = h @ p["ew3"] + p["eb3"]
    L = eps.shape[1]
    mu, log_var = out[:, :L], out[:, L:]
    z = mu + eps * jnp.sqrt(jnp.exp(log_var))
    d = leaky(z @ p["dw1"] + p["db1"])
    d = leaky(d @ p["dw2"] + p["db2"])
    mu_prime = jax.nn.sigmoid(d @ p["dw3"] + p["db3"])
    return mu_prime, mu, log_var


def _check(name, x, eps, params, prepared):
    mu_prime, mu, log_var = jax.block_until_ready(vae_forward(x, eps, prepared))
    ref_mu_prime, ref_mu, ref_log_var = vae_reference(x, eps, params)
    assert jnp.allclose(mu_prime, ref_mu_prime, atol=1e-5, rtol=1e-5), name
    assert jnp.allclose(mu, ref_mu, atol=1e-5, rtol=1e-5), name
    assert jnp.allclose(log_var, ref_log_var, atol=1e-5, rtol=1e-5), name


if __name__ == "__main__":
    key = jax.random.PRNGKey(0)

    # Small demo sizes consistent with the module (f32 matmul path: at F=32 the
    # MXU is padding-dominated, so bf16 would not help; fusion is the win).
    in_features, latent_size, batch = 32, 8, 8
    k_params, k_x, k_eps, k2 = jax.random.split(key, 4)
    params = init_params(k_params, in_features, latent_size)
    prepared = prepare_params(params, use_bf16_matmul=False)
    x = jax.random.uniform(k_x, (batch, in_features), jnp.float32)
    # epsilon ~ N(0,1), matching torch.randn_like(log_var) (different RNG stream).
    eps = jax.random.normal(k_eps, (batch, latent_size), jnp.float32)
    _check("small", x, eps, params, prepared)

    # Second config exercising the multi-program (>=2 tiles) path + row padding.
    in_features2, latent_size2, batch2 = 48, 16, 40
    k_params2, k_x2, k_eps2 = jax.random.split(k2, 3)
    params2 = init_params(k_params2, in_features2, latent_size2)
    prepared2 = prepare_params(params2, use_bf16_matmul=False)
    x2 = jax.random.uniform(k_x2, (batch2, in_features2), jnp.float32)
    eps2 = jax.random.normal(k_eps2, (batch2, latent_size2), jnp.float32)
    _check("multi-tile", x2, eps2, params2, prepared2)

    print("KERNEL_OK")
</pallas_src>

<mosaic_0001>
module attributes {stable_mosaic.version = 11 : i64} {
  func.func @vae_kernel(%arg0: i32, %arg1: memref<8x128xf32, #tpu.memory_space<vmem>>, %arg2: memref<8x128xf32, #tpu.memory_space<vmem>>, %arg3: memref<128x128xf32, #tpu.memory_space<vmem>>, %arg4: memref<1x128xf32, #tpu.memory_space<vmem>>, %arg5: memref<128x128xf32, #tpu.memory_space<vmem>>, %arg6: memref<1x128xf32, #tpu.memory_space<vmem>>, %arg7: memref<128x128xf32, #tpu.memory_space<vmem>>, %arg8: memref<1x128xf32, #tpu.memory_space<vmem>>, %arg9: memref<128x128xf32, #tpu.memory_space<vmem>>, %arg10: memref<1x128xf32, #tpu.memory_space<vmem>>, %arg11: memref<128x128xf32, #tpu.memory_space<vmem>>, %arg12: memref<1x128xf32, #tpu.memory_space<vmem>>, %arg13: memref<128x128xf32, #tpu.memory_space<vmem>>, %arg14: memref<1x128xf32, #tpu.memory_space<vmem>>, %arg15: memref<128x128xf32, #tpu.memory_space<vmem>>, %arg16: memref<1x128xf32, #tpu.memory_space<vmem>>, %arg17: memref<8x128xf32, #tpu.memory_space<vmem>>, %arg18: memref<8x128xf32, #tpu.memory_space<vmem>>, %arg19: memref<8x128xf32, #tpu.memory_space<vmem>>) attributes {dimension_semantics = [#tpu.dimension_semantics<parallel>], iteration_bounds = array<i64: 1>, scalar_prefetch = 0 : i64, scratch_operands = 0 : i64, tpu.core_type = #tpu.core_type<tc>, window_params = [{transform_indices = @transform_0, window_bounds = array<i64: 8, 128>}, {transform_indices = @transform_1, window_bounds = array<i64: 8, 128>}, {pipeline_mode = #tpu.pipeline_mode<synchronous>, transform_indices = @transform_2, window_bounds = array<i64: 128, 128>}, {pipeline_mode = #tpu.pipeline_mode<synchronous>, transform_indices = @transform_3, window_bounds = array<i64: 1, 128>}, {pipeline_mode = #tpu.pipeline_mode<synchronous>, transform_indices = @transform_4, window_bounds = array<i64: 128, 128>}, {pipeline_mode = #tpu.pipeline_mode<synchronous>, transform_indices = @transform_5, window_bounds = array<i64: 1, 128>}, {pipeline_mode = #tpu.pipeline_mode<synchronous>, transform_indices = @transform_6, window_bounds = array<i64: 128, 128>}, {pipeline_mode = #tpu.pipeline_mode<synchronous>, transform_indices = @transform_7, window_bounds = array<i64: 1, 128>}, {pipeline_mode = #tpu.pipeline_mode<synchronous>, transform_indices = @transform_8, window_bounds = array<i64: 128, 128>}, {pipeline_mode = #tpu.pipeline_mode<synchronous>, transform_indices = @transform_9, window_bounds = array<i64: 1, 128>}, {pipeline_mode = #tpu.pipeline_mode<synchronous>, transform_indices = @transform_10, window_bounds = array<i64: 128, 128>}, {pipeline_mode = #tpu.pipeline_mode<synchronous>, transform_indices = @transform_11, window_bounds = array<i64: 1, 128>}, {pipeline_mode = #tpu.pipeline_mode<synchronous>, transform_indices = @transform_12, window_bounds = array<i64: 128, 128>}, {pipeline_mode = #tpu.pipeline_mode<synchronous>, transform_indices = @transform_13, window_bounds = array<i64: 1, 128>}, {pipeline_mode = #tpu.pipeline_mode<synchronous>, transform_indices = @transform_14, window_bounds = array<i64: 128, 128>}, {pipeline_mode = #tpu.pipeline_mode<synchronous>, transform_indices = @transform_15, window_bounds = array<i64: 1, 128>}, {transform_indices = @transform_16, window_bounds = array<i64: 8, 128>}, {transform_indices = @transform_17, window_bounds = array<i64: 8, 128>}, {transform_indices = @transform_18, window_bounds = array<i64: 8, 128>}]} {
    %c0 = arith.constant 0 : index
    %c0_0 = arith.constant 0 : index
    %0 = vector.load %arg1[%c0, %c0_0] : memref<8x128xf32, #tpu.memory_space<vmem>>, vector<8x128xf32>
    %c0_1 = arith.constant 0 : index
    %c0_2 = arith.constant 0 : index
    %1 = vector.load %arg3[%c0_1, %c0_2] : memref<128x128xf32, #tpu.memory_space<vmem>>, vector<128x128xf32>
    %cst = arith.constant dense<0.000000e+00> : vector<8x128xf32>
    %2 = tpu.matmul %0, %1, %cst {dimension_numbers = #tpu.dot_dimension_numbers<[1], [0], [0], [1], [0, 0, 1, 1], [], []>} : vector<8x128xf32>, vector<128x128xf32>, vector<8x128xf32> -> vector<8x128xf32>
    %c0_3 = arith.constant 0 : index
    %c0_4 = arith.constant 0 : index
    %3 = vector.load %arg4[%c0_3, %c0_4] : memref<1x128xf32, #tpu.memory_space<vmem>>, vector<1x128xf32>
    %4 = vector.broadcast %3 : vector<1x128xf32> to vector<8x128xf32>
    %5 = arith.addf %2, %4 : vector<8x128xf32>
    %cst_5 = arith.constant 0.000000e+00 : f32
    %6 = vector.broadcast %cst_5 : f32 to vector<8x128xf32>
    %7 = arith.cmpf oge, %5, %6 : vector<8x128xf32>
    %cst_6 = arith.constant 0.00999999977 : f32
    %8 = vector.broadcast %cst_6 : f32 to vector<8x128xf32>
    %9 = arith.mulf %8, %5 : vector<8x128xf32>
    %10 = arith.select %7, %5, %9 : vector<8x128xi1>, vector<8x128xf32>
    %c0_7 = arith.constant 0 : index
    %c0_8 = arith.constant 0 : index
    %11 = vector.load %arg5[%c0_7, %c0_8] : memref<128x128xf32, #tpu.memory_space<vmem>>, vector<128x128xf32>
    %cst_9 = arith.constant dense<0.000000e+00> : vector<8x128xf32>
    %12 = tpu.matmul %10, %11, %cst_9 {dimension_numbers = #tpu.dot_dimension_numbers<[1], [0], [0], [1], [0, 0, 1, 1], [], []>} : vector<8x128xf32>, vector<128x128xf32>, vector<8x128xf32> -> vector<8x128xf32>
    %c0_10 = arith.constant 0 : index
    %c0_11 = arith.constant 0 : index
    %13 = vector.load %arg6[%c0_10, %c0_11] : memref<1x128xf32, #tpu.memory_space<vmem>>, vector<1x128xf32>
    %14 = vector.broadcast %13 : vector<1x128xf32> to vector<8x128xf32>
    %15 = arith.addf %12, %14 : vector<8x128xf32>
    %cst_12 = arith.constant 0.000000e+00 : f32
    %16 = vector.broadcast %cst_12 : f32 to vector<8x128xf32>
    %17 = arith.cmpf oge, %15, %16 : vector<8x128xf32>
    %cst_13 = arith.constant 0.00999999977 : f32
    %18 = vector.broadcast %cst_13 : f32 to vector<8x128xf32>
    %19 = arith.mulf %18, %15 : vector<8x128xf32>
    %20 = arith.select %17, %15, %19 : vector<8x128xi1>, vector<8x128xf32>
    %c0_14 = arith.constant 0 : index
    %c0_15 = arith.constant 0 : index
    %21 = vector.load %arg7[%c0_14, %c0_15] : memref<128x128xf32, #tpu.memory_space<vmem>>, vector<128x128xf32>
    %cst_16 = arith.constant dense<0.000000e+00> : vector<8x128xf32>
    %22 = tpu.matmul %20, %21, %cst_16 {dimension_numbers = #tpu.dot_dimension_numbers<[1], [0], [0], [1], [0, 0, 1, 1], [], []>} : vector<8x128xf32>, vector<128x128xf32>, vector<8x128xf32> -> vector<8x128xf32>
    %c0_17 = arith.constant 0 : index
    %c0_18 = arith.constant 0 : index
    %23 = vector.load %arg8[%c0_17, %c0_18] : memref<1x128xf32, #tpu.memory_space<vmem>>, vector<1x128xf32>
    %24 = vector.broadcast %23 : vector<1x128xf32> to vector<8x128xf32>
    %25 = arith.addf %22, %24 : vector<8x128xf32>
    %c0_19 = arith.constant 0 : index
    %c0_20 = arith.constant 0 : index
    %26 = vector.load %arg9[%c0_19, %c0_20] : memref<128x128xf32, #tpu.memory_space<vmem>>, vector<128x128xf32>
    %cst_21 = arith.constant dense<0.000000e+00> : vector<8x128xf32>
    %27 = tpu.matmul %20, %26, %cst_21 {dimension_numbers = #tpu.dot_dimension_numbers<[1], [0], [0], [1], [0, 0, 1, 1], [], []>} : vector<8x128xf32>, vector<128x128xf32>, vector<8x128xf32> -> vector<8x128xf32>
    %c0_22 = arith.constant 0 : index
    %c0_23 = arith.constant 0 : index
    %28 = vector.load %arg10[%c0_22, %c0_23] : memref<1x128xf32, #tpu.memory_space<vmem>>, vector<1x128xf32>
    %29 = vector.broadcast %28 : vector<1x128xf32> to vector<8x128xf32>
    %30 = arith.addf %27, %29 : vector<8x128xf32>
    %c0_24 = arith.constant 0 : index
    %c0_25 = arith.constant 0 : index
    %31 = vector.load %arg18[%c0_24, %c0_25] : memref<8x128xf32, #tpu.memory_space<vmem>>, vector<8x128xf32>
    tpu.vector_store %arg18[%c0_24, %c0_25], %25 {strides = array<i32>} : memref<8x128xf32, #tpu.memory_space<vmem>>, vector<8x128xf32>,
    %c0_26 = arith.constant 0 : index
    %c0_27 = arith.constant 0 : index
    %32 = vector.load %arg19[%c0_26, %c0_27] : memref<8x128xf32, #tpu.memory_space<vmem>>, vector<8x128xf32>
    tpu.vector_store %arg19[%c0_26, %c0_27], %30 {strides = array<i32>} : memref<8x128xf32, #tpu.memory_space<vmem>>, vector<8x128xf32>,
    %c0_28 = arith.constant 0 : index
    %c0_29 = arith.constant 0 : index
    %33 = vector.load %arg2[%c0_28, %c0_29] : memref<8x128xf32, #tpu.memory_space<vmem>>, vector<8x128xf32>
    %cst_30 = arith.constant 5.000000e-01 : f32
    %34 = vector.broadcast %cst_30 : f32 to vector<8x128xf32>
    %35 = arith.mulf %34, %30 : vector<8x128xf32>
    %36 = math.exp %35 : vector<8x128xf32>
    %37 = arith.mulf %33, %36 : vector<8x128xf32>
    %38 = arith.addf %25, %37 : vector<8x128xf32>
    %c0_31 = arith.constant 0 : index
    %c0_32 = arith.constant 0 : index
    %39 = vector.load %arg11[%c0_31, %c0_32] : memref<128x128xf32, #tpu.memory_space<vmem>>, vector<128x128xf32>
    %cst_33 = arith.constant dense<0.000000e+00> : vector<8x128xf32>
    %40 = tpu.matmul %38, %39, %cst_33 {dimension_numbers = #tpu.dot_dimension_numbers<[1], [0], [0], [1], [0, 0, 1, 1], [], []>} : vector<8x128xf32>, vector<128x128xf32>, vector<8x128xf32> -> vector<8x128xf32>
    %c0_34 = arith.constant 0 : index
    %c0_35 = arith.constant 0 : index
    %41 = vector.load %arg12[%c0_34, %c0_35] : memref<1x128xf32, #tpu.memory_space<vmem>>, vector<1x128xf32>
    %42 = vector.broadcast %41 : vector<1x128xf32> to vector<8x128xf32>
    %43 = arith.addf %40, %42 : vector<8x128xf32>
    %cst_36 = arith.constant 0.000000e+00 : f32
    %44 = vector.broadcast %cst_36 : f32 to vector<8x128xf32>
    %45 = arith.cmpf oge, %43, %44 : vector<8x128xf32>
    %cst_37 = arith.constant 0.00999999977 : f32
    %46 = vector.broadcast %cst_37 : f32 to vector<8x128xf32>
    %47 = arith.mulf %46, %43 : vector<8x128xf32>
    %48 = arith.select %45, %43, %47 : vector<8x128xi1>, vector<8x128xf32>
    %c0_38 = arith.constant 0 : index
    %c0_39 = arith.constant 0 : index
    %49 = vector.load %arg13[%c0_38, %c0_39] : memref<128x128xf32, #tpu.memory_space<vmem>>, vector<128x128xf32>
    %cst_40 = arith.constant dense<0.000000e+00> : vector<8x128xf32>
    %50 = tpu.matmul %48, %49, %cst_40 {dimension_numbers = #tpu.dot_dimension_numbers<[1], [0], [0], [1], [0, 0, 1, 1], [], []>} : vector<8x128xf32>, vector<128x128xf32>, vector<8x128xf32> -> vector<8x128xf32>
    %c0_41 = arith.constant 0 : index
    %c0_42 = arith.constant 0 : index
    %51 = vector.load %arg14[%c0_41, %c0_42] : memref<1x128xf32, #tpu.memory_space<vmem>>, vector<1x128xf32>
    %52 = vector.broadcast %51 : vector<1x128xf32> to vector<8x128xf32>
    %53 = arith.addf %50, %52 : vector<8x128xf32>
    %cst_43 = arith.constant 0.000000e+00 : f32
    %54 = vector.broadcast %cst_43 : f32 to vector<8x128xf32>
    %55 = arith.cmpf oge, %53, %54 : vector<8x128xf32>
    %cst_44 = arith.constant 0.00999999977 : f32
    %56 = vector.broadcast %cst_44 : f32 to vector<8x128xf32>
    %57 = arith.mulf %56, %53 : vector<8x128xf32>
    %58 = arith.select %55, %53, %57 : vector<8x128xi1>, vector<8x128xf32>
    %c0_45 = arith.constant 0 : index
    %c0_46 = arith.constant 0 : index
    %59 = vector.load %arg15[%c0_45, %c0_46] : memref<128x128xf32, #tpu.memory_space<vmem>>, vector<128x128xf32>
    %cst_47 = arith.constant dense<0.000000e+00> : vector<8x128xf32>
    %60 = tpu.matmul %58, %59, %cst_47 {dimension_numbers = #tpu.dot_dimension_numbers<[1], [0], [0], [1], [0, 0, 1, 1], [], []>} : vector<8x128xf32>, vector<128x128xf32>, vector<8x128xf32> -> vector<8x128xf32>
    %c0_48 = arith.constant 0 : index
    %c0_49 = arith.constant 0 : index
    %61 = vector.load %arg16[%c0_48, %c0_49] : memref<1x128xf32, #tpu.memory_space<vmem>>, vector<1x128xf32>
    %62 = vector.broadcast %61 : vector<1x128xf32> to vector<8x128xf32>
    %63 = arith.addf %60, %62 : vector<8x128xf32>
    %64 = arith.negf %63 : vector<8x128xf32>
    %65 = math.exp %64 : vector<8x128xf32>
    %cst_50 = arith.constant 1.000000e+00 : f32
    %66 = vector.broadcast %cst_50 : f32 to vector<8x128xf32>
    %67 = arith.addf %66, %65 : vector<8x128xf32>
    %68 = arith.divf %66, %67 : vector<8x128xf32>
    %c0_51 = arith.constant 0 : index
    %c0_52 = arith.constant 0 : index
    %69 = vector.load %arg17[%c0_51, %c0_52] : memref<8x128xf32, #tpu.memory_space<vmem>>, vector<8x128xf32>
    tpu.vector_store %arg17[%c0_51, %c0_52], %68 {strides = array<i32>} : memref<8x128xf32, #tpu.memory_space<vmem>>, vector<8x128xf32>,
    return
  }
  func.func @transform_0(%arg0: i32) -> (i32, i32) {
    %c0_i32 = arith.constant 0 : i32
    %c0_i32_0 = arith.constant 0 : i32
    return %arg0, %c0_i32 : i32, i32
  }
  func.func @transform_1(%arg0: i32) -> (i32, i32) {
    %c0_i32 = arith.constant 0 : i32
    %c0_i32_0 = arith.constant 0 : i32
    return %arg0, %c0_i32 : i32, i32
  }
  func.func @transform_2(%arg0: i32) -> (i32, i32) {
    %c0_i32 = arith.constant 0 : i32
    %c0_i32_0 = arith.constant 0 : i32
    %c0_i32_1 = arith.constant 0 : i32
    return %c0_i32, %c0_i32_0 : i32, i32
  }
  func.func @transform_3(%arg0: i32) -> (i32, i32) {
    %c0_i32 = arith.constant 0 : i32
    %c0_i32_0 = arith.constant 0 : i32
    %c0_i32_1 = arith.constant 0 : i32
    return %c0_i32, %c0_i32_0 : i32, i32
  }
  func.func @transform_4(%arg0: i32) -> (i32, i32) {
    %c0_i32 = arith.constant 0 : i32
    %c0_i32_0 = arith.constant 0 : i32
    %c0_i32_1 = arith.constant 0 : i32
    return %c0_i32, %c0_i32_0 : i32, i32
  }
  func.func @transform_5(%arg0: i32) -> (i32, i32) {
    %c0_i32 = arith.constant 0 : i32
    %c0_i32_0 = arith.constant 0 : i32
    %c0_i32_1 = arith.constant 0 : i32
    return %c0_i32, %c0_i32_0 : i32, i32
  }
  func.func @transform_6(%arg0: i32) -> (i32, i32) {
    %c0_i32 = arith.constant 0 : i32
    %c0_i32_0 = arith.constant 0 : i32
    %c0_i32_1 = arith.constant 0 : i32
    return %c0_i32, %c0_i32_0 : i32, i32
  }
  func.func @transform_7(%arg0: i32) -> (i32, i32) {
    %c0_i32 = arith.constant 0 : i32
    %c0_i32_0 = arith.constant 0 : i32
    %c0_i32_1 = arith.constant 0 : i32
    return %c0_i32, %c0_i32_0 : i32, i32
  }
  func.func @transform_8(%arg0: i32) -> (i32, i32) {
    %c0_i32 = arith.constant 0 : i32
    %c0_i32_0 = arith.constant 0 : i32
    %c0_i32_1 = arith.constant 0 : i32
    return %c0_i32, %c0_i32_0 : i32, i32
  }
  func.func @transform_9(%arg0: i32) -> (i32, i32) {
    %c0_i32 = arith.constant 0 : i32
    %c0_i32_0 = arith.constant 0 : i32
    %c0_i32_1 = arith.constant 0 : i32
    return %c0_i32, %c0_i32_0 : i32, i32
  }
  func.func @transform_10(%arg0: i32) -> (i32, i32) {
    %c0_i32 = arith.constant 0 : i32
    %c0_i32_0 = arith.constant 0 : i32
    %c0_i32_1 = arith.constant 0 : i32
    return %c0_i32, %c0_i32_0 : i32, i32
  }
  func.func @transform_11(%arg0: i32) -> (i32, i32) {
    %c0_i32 = arith.constant 0 : i32
    %c0_i32_0 = arith.constant 0 : i32
    %c0_i32_1 = arith.constant 0 : i32
    return %c0_i32, %c0_i32_0 : i32, i32
  }
  func.func @transform_12(%arg0: i32) -> (i32, i32) {
    %c0_i32 = arith.constant 0 : i32
    %c0_i32_0 = arith.constant 0 : i32
    %c0_i32_1 = arith.constant 0 : i32
    return %c0_i32, %c0_i32_0 : i32, i32
  }
  func.func @transform_13(%arg0: i32) -> (i32, i32) {
    %c0_i32 = arith.constant 0 : i32
    %c0_i32_0 = arith.constant 0 : i32
    %c0_i32_1 = arith.constant 0 : i32
    return %c0_i32, %c0_i32_0 : i32, i32
  }
  func.func @transform_14(%arg0: i32) -> (i32, i32) {
    %c0_i32 = arith.constant 0 : i32
    %c0_i32_0 = arith.constant 0 : i32
    %c0_i32_1 = arith.constant 0 : i32
    return %c0_i32, %c0_i32_0 : i32, i32
  }
  func.func @transform_15(%arg0: i32) -> (i32, i32) {
    %c0_i32 = arith.constant 0 : i32
    %c0_i32_0 = arith.constant 0 : i32
    %c0_i32_1 = arith.constant 0 : i32
    return %c0_i32, %c0_i32_0 : i32, i32
  }
  func.func @transform_16(%arg0: i32) -> (i32, i32) {
    %c0_i32 = arith.constant 0 : i32
    %c0_i32_0 = arith.constant 0 : i32
    return %arg0, %c0_i32 : i32, i32
  }
  func.func @transform_17(%arg0: i32) -> (i32, i32) {
    %c0_i32 = arith.constant 0 : i32
    %c0_i32_0 = arith.constant 0 : i32
    return %arg0, %c0_i32 : i32, i32
  }
  func.func @transform_18(%arg0: i32) -> (i32, i32) {
    %c0_i32 = arith.constant 0 : i32
    %c0_i32_0 = arith.constant 0 : i32
    return %arg0, %c0_i32 : i32, i32
  }
}

</mosaic_0001>

<bundles_post_ra>
// kernel: vae_forward.1
= control target key start
LH: loop header
LB: loop body
LE: loop exit
PB: predicated region body
PF: predicated region fallthrough
CT: control target
= control target key end

     0   :  { %s1794_s0 = inlined_call_operand.vmem [shape: f32[8,128], index: 0, kind: input, shape index: {}]   ;;  %s1795_s1 = inlined_call_operand.vmem [shape: f32[8,128], index: 1, kind: input, shape index: {}]   ;;  %s1796_s2 = inlined_call_operand.hbm [shape: f32[128,128], index: 2, kind: input, shape index: {}]   ;;  %s1797_s3 = inlined_call_operand.vmem [shape: f32[1,128], index: 3, kind: input, shape index: {}]   ;;  %s1798_s4 = inlined_call_operand.hbm [shape: f32[128,128], index: 4, kind: input, shape index: {}]   ;;  %s1799_s5 = inlined_call_operand.vmem [shape: f32[1,128], index: 5, kind: input, shape index: {}]   ;;  %s1800_s6 = inlined_call_operand.hbm [shape: f32[128,128], index: 6, kind: input, shape index: {}]   ;;  %s1801_s7 = inlined_call_operand.vmem [shape: f32[1,128], index: 7, kind: input, shape index: {}]   ;;  %s1802_s8 = inlined_call_operand.hbm [shape: f32[128,128], index: 8, kind: input, shape index: {}]   ;;  %s1803_s9 = inlined_call_operand.vmem [shape: f32[1,128], index: 9, kind: input, shape index: {}]   ;;  %s1804_s10 = inlined_call_operand.hbm [shape: f32[128,128], index: 10, kind: input, shape index: {}]   ;;  %s1805_s11 = inlined_call_operand.vmem [shape: f32[1,128], index: 11, kind: input, shape index: {}]   ;;  %s1806_s12 = inlined_call_operand.hbm [shape: f32[128,128], index: 12, kind: input, shape index: {}]   ;;  %s1807_s13 = inlined_call_operand.vmem [shape: f32[1,128], index: 13, kind: input, shape index: {}]   ;;  %s1808_s14 = inlined_call_operand.hbm [shape: f32[128,128], index: 14, kind: input, shape index: {}]   ;;  %s1809_s15 = inlined_call_operand.vmem [shape: f32[1,128], index: 15, kind: input, shape index: {}]   ;;  %s1810_s16 = inlined_call_operand.hbm [shape: f32[8,128], index: 16, kind: output, shape index: {0}]   ;;  %s1811_s17 = inlined_call_operand.hbm [shape: f32[8,128], index: 17, kind: output, shape index: {1}]   ;;  %s1812_s18 = inlined_call_operand.hbm [shape: f32[8,128], index: 18, kind: output, shape index: {2}]  }
   0x1   :  { %1813 = sst [smem:[#allocation24_spill]] %s1794_s0 }
   0x2   :  { %1814 = sst [smem:[#allocation25_spill]] %s1795_s1 }
   0x3   :  { %1815 = sst [smem:[#allocation26_spill]] %s1796_s2 }
   0x4   :  { %24 = vsyncpa [#allocation3], 0 }
   0x5   :  { %25 = vsyncpa [#allocation6], 0 }
   0x6   :  { %26 = vsyncpa [#allocation9], 0 }
   0x7   :  { %27 = vsyncpa [#allocation12], 0 }
   0x8   :  { %28 = vsyncpa [#allocation4], 0 }
   0x9   :  { %29 = vsyncpa [#allocation16], 0  ;;  %s1481_s27 = smov [#allocation5]   ;;  %s1482_s29 = smov [#allocation8]  }
   0xa   :  { %s53_s28 = sshll.u32 %s1481_s27, 4  ;;  %s81_s30 = sshll.u32 %s1482_s29, 4  ;;  %s54_s28 = int_to_ptr.vmem [resolvable:$true] %s53_s28  ;;  %s82_s30 = int_to_ptr.vmem [resolvable:$true] %s81_s30 }
   0xb   :  { %s1277_s0 = scalar_lea.vmem %s54_s28, 2048  ;;  %p1282_p1 = scmp.lt.s32.totalorder %s54_s28, %s54_s28 }
   0xc   :  { %p1278_p0 = scmp.ne.s32.totalorder %s54_s28, %s1277_s0  ;;  %p1283_p2 = scmp.lt.s32.totalorder %s1277_s0, %s1277_s0 }
   0xe   :  { %p1284_p3 = por %p1283_p2, %p1282_p1 }
  0x10   :  { %p1285_p4 = pnand %p1284_p3, %p1278_p0 }
  0x12   :  { %1288 = shalt.err (!%p1285_p4)
}
  0x13   :  { %s1483_s19 = smov 128   ;;  %s1484_s1 = smov 8  }
  0x14   :  { %59 = dma.hbm_to_vmem [thread:$0]  %s1798_s4, 2048, %s54_s28, [#allocation6], %s1483_s19, %s1483_s19, %s1484_s1  }
  0x15   :  { %s1297_s22 = scalar_lea.vmem %s82_s30, 2048  ;;  %p1302_p6 = scmp.lt.s32.totalorder %s82_s30, %s82_s30 }
  0x16   :  { %p1298_p5 = scmp.ne.s32.totalorder %s82_s30, %s1297_s22  ;;  %p1303_p7 = scmp.lt.s32.totalorder %s1297_s22, %s1297_s22 }
  0x18   :  { %p1304_p8 = por %p1303_p7, %p1302_p6 }
  0x1a   :  { %p1305_p9 = pnand %p1304_p8, %p1298_p5 }
  0x1c   :  { %1308 = shalt.err (!%p1305_p9)
}
  0x1d   :  { %87 = dma.hbm_to_vmem [thread:$0]  %s1802_s8, 2048, %s82_s30, [#allocation9], %s1483_s19, %s1483_s19, %s1484_s1  }
  0x1e   :  { %s1485_s24 = smov [#allocation11]   ;;  %s1486_s26 = smov [#allocation2]  }
  0x1f   :  { %s109_s25 = sshll.u32 %s1485_s24, 4  ;;  %s39_s27 = sshll.u32 %s1486_s26, 4  ;;  %s110_s25 = int_to_ptr.vmem [resolvable:$true] %s109_s25  ;;  %s40_s27 = int_to_ptr.vmem [resolvable:$true] %s39_s27 }
  0x20   :  { %s1317_s4 = scalar_lea.vmem %s110_s25, 2048  ;;  %p1322_p11 = scmp.lt.s32.totalorder %s110_s25, %s110_s25 }
  0x21   :  { %p1318_p10 = scmp.ne.s32.totalorder %s110_s25, %s1317_s4  ;;  %p1323_p12 = scmp.lt.s32.totalorder %s1317_s4, %s1317_s4 }
  0x23   :  { %p1324_p13 = por %p1323_p12, %p1322_p11 }
  0x25   :  { %p1325_p0 = pnand %p1324_p13, %p1318_p10 }
  0x27   :  { %1328 = shalt.err (!%p1325_p0)
}
  0x28   :  { %115 = dma.hbm_to_vmem [thread:$0]  %s1806_s12, 2048, %s110_s25, [#allocation12], %s1483_s19, %s1483_s19, %s1484_s1  }
  0x29   :  { %s1337_s8 = scalar_lea.vmem %s40_s27, 2048  ;;  %p1342_p2 = scmp.lt.s32.totalorder %s40_s27, %s40_s27 }
  0x2a   :  { %p1338_p1 = scmp.ne.s32.totalorder %s40_s27, %s1337_s8  ;;  %p1343_p3 = scmp.lt.s32.totalorder %s1337_s8, %s1337_s8 }
  0x2c   :  { %p1344_p4 = por %p1343_p3, %p1342_p2 }
  0x2e   :  { %p1345_p5 = pnand %p1344_p4, %p1338_p1 }
  0x30   :  { %1348 = shalt.err (!%p1345_p5)
}
  0x31   :  { %s1816_s20 = sld [smem:[#allocation26_spill]]  ;;  %s1487_s21 = smov [#allocation7]  }
  0x32   :  { %s67_s22 = sshll.u32 %s1487_s21, 4  ;;  %s1488_s2 = smov [#allocation10]   ;;  %s68_s22 = int_to_ptr.vmem [resolvable:$true] %s67_s22 }
  0x33   :  { %s95_s23 = sshll.u32 %s1488_s2, 4  ;;  %s1357_s12 = scalar_lea.vmem %s68_s22, 2048  ;;  %s96_s23 = int_to_ptr.vmem [resolvable:$true] %s95_s23 }
  0x34   :  { %p1358_p6 = scmp.ne.s32.totalorder %s68_s22, %s1357_s12  ;;  %p1362_p7 = scmp.lt.s32.totalorder %s68_s22, %s68_s22 }
  0x35   :  { %p1363_p8 = scmp.lt.s32.totalorder %s1357_s12, %s1357_s12 }
  0x37   :  { %45 = dma.hbm_to_vmem [thread:$0]  %s1816_s20, 2048, %s40_s27, [#allocation3], %s1483_s19, %s1483_s19, %s1484_s1  }
  0x38   :  { %p1364_p9 = por %p1363_p8, %p1362_p7 }
  0x3a   :  { %p1365_p10 = pnand %p1364_p9, %p1358_p6 }
  0x3c   :  { %1368 = shalt.err (!%p1365_p10)
}
  0x3d   :  { %73 = dma.hbm_to_vmem [thread:$0]  %s1800_s6, 2048, %s68_s22, [#allocation6], %s1483_s19, %s1483_s19, %s1484_s1  }
  0x3e   :  { %s1377_s26 = scalar_lea.vmem %s96_s23, 2048  ;;  %p1382_p12 = scmp.lt.s32.totalorder %s96_s23, %s96_s23 }
  0x3f   :  { %p1378_p11 = scmp.ne.s32.totalorder %s96_s23, %s1377_s26  ;;  %p1383_p13 = scmp.lt.s32.totalorder %s1377_s26, %s1377_s26 }
  0x41   :  { %p1384_p0 = por %p1383_p13, %p1382_p12 }
  0x43   :  { %p1385_p1 = pnand %p1384_p0, %p1378_p11 }
  0x45   :  { %1388 = shalt.err (!%p1385_p1)
}
  0x46   :  { %101 = dma.hbm_to_vmem [thread:$0]  %s1804_s10, 2048, %s96_s23, [#allocation9], %s1483_s19, %s1483_s19, %s1484_s1  }
  0x47   :  { %s1489_s28 = smov [#allocation13]  }
  0x48   :  { %s123_s29 = sshll.u32 %s1489_s28, 4  ;;  %s124_s29 = int_to_ptr.vmem [resolvable:$true] %s123_s29 }
  0x49   :  { %s1397_s8 = scalar_lea.vmem %s124_s29, 2048  ;;  %p1402_p3 = scmp.lt.s32.totalorder %s124_s29, %s124_s29 }
  0x4a   :  { %p1398_p2 = scmp.ne.s32.totalorder %s124_s29, %s1397_s8  ;;  %p1403_p4 = scmp.lt.s32.totalorder %s1397_s8, %s1397_s8 }
  0x4c   :  { %p1404_p5 = por %p1403_p4, %p1402_p3 }
  0x4e   :  { %p1405_p6 = pnand %p1404_p5, %p1398_p2 }
  0x50   :  { %1408 = shalt.err (!%p1405_p6)
}
  0x51   :  { %129 = dma.hbm_to_vmem [thread:$0]  %s1808_s14, 2048, %s124_s29, [#allocation12], %s1483_s19, %s1483_s19, %s1484_s1  }
  0x52   :  { %1469 = dma.done.wait [#allocation3], 2048  }
  0x53   :  { %1470 = vsyncadd [#allocation3], 4294965248 }
  0x54   :  { %1471 = dma.done.wait [#allocation6], 4096  }
  0x55   :  { %1472 = vsyncadd [#allocation6], 4294963200 }
  0x56   :  { %1473 = dma.done.wait [#allocation9], 4096  }
  0x57   :  { %1474 = vsyncadd [#allocation9], 4294963200 }
  0x58   :  { %1475 = dma.done.wait [#allocation12], 4096  }
  0x59   :  { %1476 = vsyncadd [#allocation12], 4294963200  ;;  %v1490_v0 = vmov 0.0   ;;  %vm1491_vm0 = vmmov 0   ;;  %v169_v1 = vld [vmem:[#allocation2 + $0x78] sm:$0xff]  ;;  %v168_v2 = vld [vmem:[#allocation2 + $0x70] sm:$0xff] }
  0x5a   :  { %1004 = vmatprep.subr.mxu0 %v1490_v0  ;;  %1036 = vmatprep.mubr.msk.f32.mxu0 %vm1491_vm0, %v1490_v0  ;;  %v167_v3 = vld [vmem:[#allocation2 + $0x68] sm:$0xff]  ;;  %v166_v4 = vld [vmem:[#allocation2 + $0x60] sm:$0xff]  ;;  %v265_v5 = vld [vmem:[#allocation5 + $0x78] sm:$0xff]  ;;  %s1817_s19 = sld [smem:[#allocation24_spill]] }
  0x5b   :  { %1039 = vmatprep.subr.mxu1 %v1490_v0  ;;  %1071 = vmatprep.mubr.msk.f32.mxu1 %vm1491_vm0, %v1490_v0  ;;  %v165_v6 = vld [vmem:[#allocation2 + $0x58] sm:$0xff]  ;;  %v264_v7 = vld [vmem:[#allocation5 + $0x70] sm:$0xff]  ;;  %v263_v8 = vld [vmem:[#allocation5 + $0x68] sm:$0xff]  ;;  %s1818_s24 = sld [smem:[#allocation25_spill]] }
  0x5c   :  { %1005 = vmatpush3.msra.mxu0 %v169_v1  ;;  %1040 = vmatpush3.msra.mxu1 %v265_v5  ;;  %v164_v9 = vld [vmem:[#allocation2 + $0x50] sm:$0xff]  ;;  %v262_v10 = vld [vmem:[#allocation5 + $0x60] sm:$0xff]  ;;  %v163_v11 = vld [vmem:[#allocation2 + $0x48] sm:$0xff] }
  0x5d   :  { %1006 = vmatprep.subr.mxu0 %v1490_v0  ;;  %1041 = vmatprep.subr.mxu1 %v1490_v0  ;;  %v261_v12 = vld [vmem:[#allocation5 + $0x58] sm:$0xff]  ;;  %v162_v13 = vld [vmem:[#allocation2 + $0x40] sm:$0xff]  ;;  %v260_v14 = vld [vmem:[#allocation5 + $0x50] sm:$0xff] }
  0x5e   :  { %1007 = vmatpush3.msra.mxu0 %v168_v2  ;;  %1042 = vmatpush3.msra.mxu1 %v264_v7  ;;  %v161_v15 = vld [vmem:[#allocation2 + $0x38] sm:$0xff]  ;;  %v259_v16 = vld [vmem:[#allocation5 + $0x48] sm:$0xff]  ;;  %v160_v17 = vld [vmem:[#allocation2 + $0x30] sm:$0xff] }
  0x5f   :  { %1008 = vmatprep.subr.mxu0 %v1490_v0  ;;  %1043 = vmatprep.subr.mxu1 %v1490_v0  ;;  %v258_v18 = vld [vmem:[#allocation5 + $0x40] sm:$0xff]  ;;  %v159_v19 = vld [vmem:[#allocation2 + $0x28] sm:$0xff]  ;;  %v257_v20 = vld [vmem:[#allocation5 + $0x38] sm:$0xff] }
  0x60   :  { %1009 = vmatpush3.msra.mxu0 %v167_v3  ;;  %1044 = vmatpush3.msra.mxu1 %v263_v8  ;;  %v158_v21 = vld [vmem:[#allocation2 + $0x20] sm:$0xff]  ;;  %v256_v22 = vld [vmem:[#allocation5 + $0x30] sm:$0xff]  ;;  %v157_v23 = vld [vmem:[#allocation2 + $0x18] sm:$0xff] }
  0x61   :  { %1010 = vmatprep.subr.mxu0 %v1490_v0  ;;  %1045 = vmatprep.subr.mxu1 %v1490_v0  ;;  %v255_v24 = vld [vmem:[#allocation5 + $0x28] sm:$0xff]  ;;  %v156_v25 = vld [vmem:[#allocation2 + $0x10] sm:$0xff]  ;;  %v254_v26 = vld [vmem:[#allocation5 + $0x20] sm:$0xff] }
  0x62   :  { %1011 = vmatpush3.msra.mxu0 %v166_v4  ;;  %1046 = vmatpush3.msra.mxu1 %v262_v10  ;;  %v155_v27 = vld [vmem:[#allocation2 + $0x8] sm:$0xff]  ;;  %v253_v28 = vld [vmem:[#allocation5 + $0x18] sm:$0xff]  ;;  %v154_v29 = vld [vmem:[#allocation2] sm:$0xff] }
  0x63   :  { %1012 = vmatprep.subr.mxu0 %v1490_v0  ;;  %1047 = vmatprep.subr.mxu1 %v1490_v0  ;;  %v153_v30 = vld [vmem:[%s1817_s19] sm:$0xff]  ;;  %v252_v31 = vld [vmem:[#allocation5 + $0x10] sm:$0xff]  ;;  %v251_v32 = vld [vmem:[#allocation5 + $0x8] sm:$0xff] }
  0x64   :  { %1013 = vmatpush3.msra.mxu0 %v165_v6  ;;  %1048 = vmatpush3.msra.mxu1 %v261_v12  ;;  %v250_v33 = vld [vmem:[#allocation5] sm:$0xff]  ;;  %v361_v34 = vld [vmem:[#allocation7 + $0x78] sm:$0xff]  ;;  %v360_v35 = vld [vmem:[#allocation7 + $0x70] sm:$0xff] }
  0x65   :  { %1014 = vmatprep.subr.mxu0 %v1490_v0  ;;  %1049 = vmatprep.subr.mxu1 %v1490_v0  ;;  %v359_v36 = vld [vmem:[#allocation7 + $0x68] sm:$0xff]  ;;  %v358_v37 = vld [vmem:[#allocation7 + $0x60] sm:$0xff]  ;;  %v357_v38 = vld [vmem:[#allocation7 + $0x58] sm:$0xff] }
  0x66   :  { %1015 = vmatpush3.msra.mxu0 %v164_v9  ;;  %1050 = vmatpush3.msra.mxu1 %v260_v14  ;;  %v356_v39 = vld [vmem:[#allocation7 + $0x50] sm:$0xff]  ;;  %v355_v40 = vld [vmem:[#allocation7 + $0x48] sm:$0xff]  ;;  %v354_v41 = vld [vmem:[#allocation7 + $0x40] sm:$0xff] }
  0x67   :  { %1016 = vmatprep.subr.mxu0 %v1490_v0  ;;  %1051 = vmatprep.subr.mxu1 %v1490_v0  ;;  %v353_v42 = vld [vmem:[#allocation7 + $0x38] sm:$0xff]  ;;  %v352_v43 = vld [vmem:[#allocation7 + $0x30] sm:$0xff]  ;;  %v351_v44 = vld [vmem:[#allocation7 + $0x28] sm:$0xff] }
  0x68   :  { %1017 = vmatpush3.msra.mxu0 %v163_v11  ;;  %1052 = vmatpush3.msra.mxu1 %v259_v16  ;;  %v350_v45 = vld [vmem:[#allocation7 + $0x20] sm:$0xff]  ;;  %v349_v46 = vld [vmem:[#allocation7 + $0x18] sm:$0xff]  ;;  %v453_v54 = vld [vmem:[#allocation8 + $0x70] sm:$0xff] }
  0x69   :  { %1018 = vmatprep.subr.mxu0 %v1490_v0  ;;  %1053 = vmatprep.subr.mxu1 %v1490_v0  ;;  %v877_v47 = vld [vmem:[%s1797_s3] ss:$0 sm:$0xff]  ;;  %v454_v52 = vld [vmem:[#allocation8 + $0x78] sm:$0xff]  ;;  %v452_v55 = vld [vmem:[#allocation8 + $0x68] sm:$0xff] }
  0x6a   :  { %1019 = vmatpush3.msra.mxu0 %v162_v13  ;;  %1054 = vmatpush3.msra.mxu1 %v258_v18  ;;  %v451_v56 = vld [vmem:[#allocation8 + $0x60] sm:$0xff]  ;;  %v450_v57 = vld [vmem:[#allocation8 + $0x58] sm:$0xff]  ;;  %v449_v58 = vld [vmem:[#allocation8 + $0x50] sm:$0xff] }
  0x6b   :  { %1020 = vmatprep.subr.mxu0 %v1490_v0  ;;  %1055 = vmatprep.subr.mxu1 %v1490_v0  ;;  %v448_v59 = vld [vmem:[#allocation8 + $0x48] sm:$0xff]  ;;  %v447_v60 = vld [vmem:[#allocation8 + $0x40] sm:$0xff]  ;;  %v446_v61 = vld [vmem:[#allocation8 + $0x38] sm:$0xff] }
  0x6c   :  { %1021 = vmatpush3.msra.mxu0 %v161_v15  ;;  %1056 = vmatpush3.msra.mxu1 %v257_v20  ;;  %v445_v62 = vld [vmem:[#allocation8 + $0x30] sm:$0xff]  ;;  %v444_v63 = vld [vmem:[#allocation8 + $0x28] sm:$0xff]  ;;  %v443_v1 = vld [vmem:[#allocation8 + $0x20] sm:$0xff] }
  0x6d   :  { %1022 = vmatprep.subr.mxu0 %v1490_v0  ;;  %1057 = vmatprep.subr.mxu1 %v1490_v0  ;;  %v442_v2 = vld [vmem:[#allocation8 + $0x18] sm:$0xff]  ;;  %v348_v3 = vld [vmem:[#allocation7 + $0x10] sm:$0xff]  ;;  %v347_v5 = vld [vmem:[#allocation7 + $0x8] sm:$0xff] }
  0x6e   :  { %1023 = vmatpush3.msra.mxu0 %v160_v17  ;;  %1058 = vmatpush3.msra.mxu1 %v256_v22  ;;  %v441_v4 = vld [vmem:[#allocation8 + $0x10] sm:$0xff]  ;;  %v440_v6 = vld [vmem:[#allocation8 + $0x8] sm:$0xff]  ;;  %v346_v7 = vld [vmem:[#allocation7] sm:$0xff] }
  0x6f   :  { %1024 = vmatprep.subr.mxu0 %v1490_v0  ;;  %1059 = vmatprep.subr.mxu1 %v1490_v0  ;;  %v439_v8 = vld [vmem:[#allocation8] sm:$0xff]  ;;  %v555_v14 = vld [vmem:[#allocation10 + $0x78] sm:$0xff]  ;;  %v554_v16 = vld [vmem:[#allocation10 + $0x70] sm:$0xff] }
  0x70   :  { %1025 = vmatpush3.msra.mxu0 %v159_v19  ;;  %1060 = vmatpush3.msra.mxu1 %v255_v24  ;;  %v878_v9 = vld [vmem:[%s1799_s5] ss:$0 sm:$0xff]  ;;  %v553_v17 = vld [vmem:[#allocation10 + $0x68] sm:$0xff]  ;;  %v551_v19 = vld [vmem:[#allocation10 + $0x58] sm:$0xff] }
  0x71   :  { %1026 = vmatprep.subr.mxu0 %v1490_v0  ;;  %1061 = vmatprep.subr.mxu1 %v1490_v0  ;;  %v552_v18 = vld [vmem:[#allocation10 + $0x60] sm:$0xff]  ;;  %v550_v20 = vld [vmem:[#allocation10 + $0x50] sm:$0xff] }
  0x72   :  { %1027 = vmatpush3.msra.mxu0 %v158_v21  ;;  %1062 = vmatpush3.msra.mxu1 %v254_v26  ;;  %v549_v21 = vld [vmem:[#allocation10 + $0x48] sm:$0xff]  ;;  %v548_v22 = vld [vmem:[#allocation10 + $0x40] sm:$0xff]  ;;  %v546_v24 = vld [vmem:[#allocation10 + $0x30] sm:$0xff] }
  0x73   :  { %1028 = vmatprep.subr.mxu0 %v1490_v0  ;;  %1063 = vmatprep.subr.mxu1 %v1490_v0  ;;  %v544_v26 = vld [vmem:[#allocation10 + $0x20] sm:$0xff] }
  0x74   :  { %1029 = vmatpush3.msra.mxu0 %v157_v23  ;;  %1064 = vmatpush3.msra.mxu1 %v253_v28  ;;  %v547_v23 = vld [vmem:[#allocation10 + $0x38] sm:$0xff]  ;;  %v542_v28 = vld [vmem:[#allocation10 + $0x10] sm:$0xff] }
  0x75   :  { %1030 = vmatprep.subr.mxu0 %v1490_v0  ;;  %1065 = vmatprep.subr.mxu1 %v1490_v0 }
  0x76   :  { %1031 = vmatpush3.msra.mxu0 %v156_v25  ;;  %1066 = vmatpush3.msra.mxu1 %v252_v31  ;;  %v545_v25 = vld [vmem:[#allocation10 + $0x28] sm:$0xff]  ;;  %v651_v31 = vld [vmem:[#allocation11 + $0x78] sm:$0xff] }
  0x77   :  { %1032 = vmatprep.subr.mxu0 %v1490_v0  ;;  %1067 = vmatprep.subr.mxu1 %v1490_v0 }
  0x78   :  { %1033 = vmatpush3.msra.mxu0 %v155_v27  ;;  %1068 = vmatpush3.msra.mxu1 %v251_v32  ;;  %v543_v27 = vld [vmem:[#allocation10 + $0x18] sm:$0xff]  ;;  %v650_v32 = vld [vmem:[#allocation11 + $0x70] sm:$0xff] }
  0x79   :  { %1034 = vmatprep.subr.mxu0 %v1490_v0  ;;  %1069 = vmatprep.subr.mxu1 %v1490_v0 }
  0x7a   :  { %1035 = vmatpush3.msra.mxu0 %v154_v29  ;;  %1070 = vmatpush3.msra.mxu1 %v250_v33  ;;  %v541_v29 = vld [vmem:[#allocation10 + $0x8] sm:$0xff] }
  0x7b   :  { %1037 = vmatmul.mubr.f32.vlgmr.msra.gmra.mxu0 %v153_v30  ;;  %1074 = vmatprep.subr.mxu0 %v1490_v0  ;;  %v540_v30 = vld [vmem:[#allocation10] sm:$0xff]  ;;  %v649_v33 = vld [vmem:[#allocation11 + $0x68] sm:$0xff] }
  0x7c   :  { %1106 = vmatprep.mubr.msk.f32.mxu0 %vm1491_vm0, %v1490_v0  ;;  %1109 = vmatprep.subr.mxu1 %v1490_v0 }
  0x7d   :  { %1075 = vmatpush3.msra.mxu0 %v361_v34  ;;  %v648_v34 = vld [vmem:[#allocation11 + $0x60] sm:$0xff] }
  0x7e   :  { %1076 = vmatprep.subr.mxu0 %v1490_v0 }
  0x7f   :  { %1077 = vmatpush3.msra.mxu0 %v360_v35  ;;  %v647_v35 = vld [vmem:[#allocation11 + $0x58] sm:$0xff] }
  0x80   :  { %1078 = vmatprep.subr.mxu0 %v1490_v0 }
  0x81   :  { %1079 = vmatpush3.msra.mxu0 %v359_v36  ;;  %v646_v36 = vld [vmem:[#allocation11 + $0x50] sm:$0xff] }
  0x82   :  { %1080 = vmatprep.subr.mxu0 %v1490_v0 }
  0x83   :  { %1081 = vmatpush3.msra.mxu0 %v358_v37  ;;  %v645_v37 = vld [vmem:[#allocation11 + $0x48] sm:$0xff] }
  0x84   :  { %1082 = vmatprep.subr.mxu0 %v1490_v0 }
  0x85   :  { %1083 = vmatpush3.msra.mxu0 %v357_v38  ;;  %v644_v38 = vld [vmem:[#allocation11 + $0x40] sm:$0xff] }
  0x86   :  { %1084 = vmatprep.subr.mxu0 %v1490_v0 }
  0x87   :  { %1085 = vmatpush3.msra.mxu0 %v356_v39  ;;  %v643_v39 = vld [vmem:[#allocation11 + $0x38] sm:$0xff] }
  0x88   :  { %1086 = vmatprep.subr.mxu0 %v1490_v0 }
  0x89   :  { %1087 = vmatpush3.msra.mxu0 %v355_v40  ;;  %v642_v40 = vld [vmem:[#allocation11 + $0x30] sm:$0xff] }
  0x8a   :  { %1088 = vmatprep.subr.mxu0 %v1490_v0 }
  0x8b   :  { %1089 = vmatpush3.msra.mxu0 %v354_v41  ;;  %v641_v41 = vld [vmem:[#allocation11 + $0x28] sm:$0xff] }
  0x8c   :  { %1090 = vmatprep.subr.mxu0 %v1490_v0 }
  0x8d   :  { %1091 = vmatpush3.msra.mxu0 %v353_v42  ;;  %v640_v42 = vld [vmem:[#allocation11 + $0x20] sm:$0xff] }
  0x8e   :  { %1092 = vmatprep.subr.mxu0 %v1490_v0 }
  0x8f   :  { %1093 = vmatpush3.msra.mxu0 %v352_v43  ;;  %v639_v43 = vld [vmem:[#allocation11 + $0x18] sm:$0xff] }
  0x90   :  { %1094 = vmatprep.subr.mxu0 %v1490_v0 }
  0x91   :  { %1095 = vmatpush3.msra.mxu0 %v351_v44  ;;  %v879_v44 = vld [vmem:[%s1801_s7] ss:$0 sm:$0xff] }
  0x92   :  { %1096 = vmatprep.subr.mxu0 %v1490_v0 }
  0x93   :  { %1097 = vmatpush3.msra.mxu0 %v350_v45  ;;  %v880_v45 = vld [vmem:[%s1803_s9] ss:$0 sm:$0xff] }
  0x94   :  { %1098 = vmatprep.subr.mxu0 %v1490_v0 }
  0x95   :  { %1099 = vmatpush3.msra.mxu0 %v349_v46 }
  0x96   :  { %1100 = vmatprep.subr.mxu0 %v1490_v0 }
  0x97   :  { %1101 = vmatpush3.msra.mxu0 %v348_v3  ;;  %v742_v3 = vld [vmem:[#allocation13 + $0x50] sm:$0xff] }
  0x98   :  { %1102 = vmatprep.subr.mxu0 %v1490_v0 }
  0x99   :  { %1103 = vmatpush3.msra.mxu0 %v347_v5  ;;  %v740_v5 = vld [vmem:[#allocation13 + $0x40] sm:$0xff] }
  0x9a   :  { %1104 = vmatprep.subr.mxu0 %v1490_v0 }
  0x9b   :  { %1105 = vmatpush3.msra.mxu0 %v346_v7  ;;  %v738_v7 = vld [vmem:[#allocation13 + $0x30] sm:$0xff] }
  0x9c   :  { %1144 = vmatprep.subr.mxu0 %v1490_v0 }
 0x13b   :  { %v243_v48 = vpop.f32.mrf.mxu0 }
 0x13c   :  { %v244_v49 = vadd.f32 %v877_v47, %v243_v48 }
 0x13d   :  { %v1038_v50 = vpop.f32.mrf.mxu0 }
 0x13e   :  { %v248_v51 = vmul.f32 0.01, %v244_v49  ;;  %vm247_vm1 = vcmp.ge.f32.partialorder %v244_v49, 0.0 }
 0x140   :  { %v249_v53 = vsel %vm247_vm1, %v244_v49, %v248_v51 }
 0x141   :  { %1072 = vmatmul.mubr.f32.vlgmr.msra.gmra.mxu1 %v249_v53 }
 0x142   :  { %1110 = vmatpush3.msra.mxu1 %v454_v52  ;;  %1141 = vmatprep.mubr.msk.f32.mxu1 %vm1491_vm0, %v1490_v0 }
 0x143   :  { %1111 = vmatprep.subr.mxu1 %v1490_v0 }
 0x144   :  { %1112 = vmatpush3.msra.mxu1 %v453_v54  ;;  %v534_v54 = vld [vmem:[%s1818_s24] sm:$0xff] }
 0x145   :  { %1113 = vmatprep.subr.mxu1 %v1490_v0 }
 0x146   :  { %1114 = vmatpush3.msra.mxu1 %v452_v55 }
 0x147   :  { %1115 = vmatprep.subr.mxu1 %v1490_v0 }
 0x148   :  { %1116 = vmatpush3.msra.mxu1 %v451_v56 }
 0x149   :  { %1117 = vmatprep.subr.mxu1 %v1490_v0 }
 0x14a   :  { %1118 = vmatpush3.msra.mxu1 %v450_v57 }
 0x14b   :  { %1119 = vmatprep.subr.mxu1 %v1490_v0 }
 0x14c   :  { %1120 = vmatpush3.msra.mxu1 %v449_v58  ;;  %v638_v58 = vld [vmem:[#allocation11 + $0x10] sm:$0xff] }
 0x14d   :  { %1121 = vmatprep.subr.mxu1 %v1490_v0 }
 0x14e   :  { %1122 = vmatpush3.msra.mxu1 %v448_v59  ;;  %v637_v59 = vld [vmem:[#allocation11 + $0x8] sm:$0xff] }
 0x14f   :  { %1123 = vmatprep.subr.mxu1 %v1490_v0 }
 0x150   :  { %1124 = vmatpush3.msra.mxu1 %v447_v60  ;;  %v636_v60 = vld [vmem:[#allocation11] sm:$0xff] }
 0x151   :  { %1125 = vmatprep.subr.mxu1 %v1490_v0 }
 0x152   :  { %1126 = vmatpush3.msra.mxu1 %v446_v61  ;;  %v747_v61 = vld [vmem:[#allocation13 + $0x78] sm:$0xff] }
 0x153   :  { %1127 = vmatprep.subr.mxu1 %v1490_v0 }
 0x154   :  { %1128 = vmatpush3.msra.mxu1 %v445_v62  ;;  %v746_v62 = vld [vmem:[#allocation13 + $0x70] sm:$0xff] }
 0x155   :  { %1129 = vmatprep.subr.mxu1 %v1490_v0 }
 0x156   :  { %1130 = vmatpush3.msra.mxu1 %v444_v63  ;;  %v745_v63 = vld [vmem:[#allocation13 + $0x68] sm:$0xff] }
 0x157   :  { %1131 = vmatprep.subr.mxu1 %v1490_v0 }
 0x158   :  { %1132 = vmatpush3.msra.mxu1 %v443_v1  ;;  %v744_v1 = vld [vmem:[#allocation13 + $0x60] sm:$0xff] }
 0x159   :  { %1133 = vmatprep.subr.mxu1 %v1490_v0 }
 0x15a   :  { %1134 = vmatpush3.msra.mxu1 %v442_v2  ;;  %v743_v2 = vld [vmem:[#allocation13 + $0x58] sm:$0xff] }
 0x15b   :  { %1135 = vmatprep.subr.mxu1 %v1490_v0 }
 0x15c   :  { %1136 = vmatpush3.msra.mxu1 %v441_v4  ;;  %v741_v4 = vld [vmem:[#allocation13 + $0x48] sm:$0xff] }
 0x15d   :  { %1137 = vmatprep.subr.mxu1 %v1490_v0 }
 0x15e   :  { %1138 = vmatpush3.msra.mxu1 %v440_v6  ;;  %v739_v6 = vld [vmem:[#allocation13 + $0x38] sm:$0xff] }
 0x15f   :  { %1139 = vmatprep.subr.mxu1 %v1490_v0 }
 0x160   :  { %1140 = vmatpush3.msra.mxu1 %v439_v8  ;;  %v737_v8 = vld [vmem:[#allocation13 + $0x28] sm:$0xff] }
 0x161   :  { %1179 = vmatprep.subr.mxu1 %v1490_v0 }
 0x201   :  { %v339_v10 = vpop.f32.mrf.mxu1 }
 0x202   :  { %v340_v11 = vadd.f32 %v878_v9, %v339_v10  ;;  %v736_v9 = vld [vmem:[#allocation13 + $0x20] sm:$0xff]  ;;  %v735_v10 = vld [vmem:[#allocation13 + $0x18] sm:$0xff] }
 0x203   :  { %v1073_v12 = vpop.f32.mrf.mxu1 }
 0x204   :  { %vm343_vm2 = vcmp.ge.f32.partialorder %v340_v11, 0.0  ;;  %v344_v13 = vmul.f32 0.01, %v340_v11 }
 0x206   :  { %v345_v15 = vsel %vm343_vm2, %v340_v11, %v344_v13  ;;  %v881_v11 = vld [vmem:[%s1805_s11] ss:$0 sm:$0xff]  ;;  %s1492_s11 = smov [#allocation15]  }
 0x207   :  { %1107 = vmatmul.mubr.f32.vlgmr.msra.gmra.mxu0 %v345_v15  ;;  %1142 = vmatmul.mubr.f32.vlgmr.msra.gmra.mxu1 %v345_v15  ;;  %s848_s27 = sshll.u32 %s1492_s11, 4  ;;  %s849_s27 = int_to_ptr.vmem [resolvable:$true] %s848_s27 }
 0x208   :  { %1145 = vmatpush3.msra.mxu0 %v555_v14  ;;  %1176 = vmatprep.mubr.msk.f32.mxu0 %vm1491_vm0, %v1490_v0  ;;  %s1409_s4 = scalar_lea.vmem %s849_s27, 128  ;;  %p1414_p8 = scmp.lt.s32.totalorder %s849_s27, %s849_s27 }
 0x209   :  { %1146 = vmatprep.subr.mxu0 %v1490_v0  ;;  %1211 = vmatprep.mubr.msk.f32.mxu1 %vm1491_vm0, %v1490_v0  ;;  %p1410_p7 = scmp.ne.s32.totalorder %s849_s27, %s1409_s4  ;;  %p1415_p9 = scmp.lt.s32.totalorder %s1409_s4, %s1409_s4 }
 0x20a   :  { %1147 = vmatpush3.msra.mxu0 %v554_v16  ;;  %1180 = vmatpush3.msra.mxu1 %v651_v31 }
 0x20b   :  { %1148 = vmatprep.subr.mxu0 %v1490_v0  ;;  %1181 = vmatprep.subr.mxu1 %v1490_v0  ;;  %p1416_p10 = por %p1415_p9, %p1414_p8 }
 0x20c   :  { %1149 = vmatpush3.msra.mxu0 %v553_v17  ;;  %1182 = vmatpush3.msra.mxu1 %v650_v32  ;;  %v734_v17 = vld [vmem:[#allocation13 + $0x10] sm:$0xff] }
 0x20d   :  { %1150 = vmatprep.subr.mxu0 %v1490_v0  ;;  %1183 = vmatprep.subr.mxu1 %v1490_v0  ;;  %p1417_p11 = pnand %p1416_p10, %p1410_p7 }
 0x20e   :  { %1151 = vmatpush3.msra.mxu0 %v552_v18  ;;  %1184 = vmatpush3.msra.mxu1 %v649_v33  ;;  %v733_v18 = vld [vmem:[#allocation13 + $0x8] sm:$0xff] }
 0x20f   :  { %1152 = vmatprep.subr.mxu0 %v1490_v0  ;;  %1185 = vmatprep.subr.mxu1 %v1490_v0 }
 0x210   :  { %1153 = vmatpush3.msra.mxu0 %v551_v19  ;;  %1186 = vmatpush3.msra.mxu1 %v648_v34  ;;  %v732_v19 = vld [vmem:[#allocation13] sm:$0xff] }
 0x211   :  { %1154 = vmatprep.subr.mxu0 %v1490_v0  ;;  %1187 = vmatprep.subr.mxu1 %v1490_v0 }
 0x212   :  { %1155 = vmatpush3.msra.mxu0 %v550_v20  ;;  %1188 = vmatpush3.msra.mxu1 %v647_v35  ;;  %v882_v20 = vld [vmem:[%s1807_s13] ss:$0 sm:$0xff] }
 0x213   :  { %1156 = vmatprep.subr.mxu0 %v1490_v0  ;;  %1189 = vmatprep.subr.mxu1 %v1490_v0 }
 0x214   :  { %1157 = vmatpush3.msra.mxu0 %v549_v21  ;;  %1190 = vmatpush3.msra.mxu1 %v646_v36 }
 0x215   :  { %1158 = vmatprep.subr.mxu0 %v1490_v0  ;;  %1191 = vmatprep.subr.mxu1 %v1490_v0 }
 0x216   :  { %1159 = vmatpush3.msra.mxu0 %v548_v22  ;;  %1192 = vmatpush3.msra.mxu1 %v645_v37 }
 0x217   :  { %1160 = vmatprep.subr.mxu0 %v1490_v0  ;;  %1193 = vmatprep.subr.mxu1 %v1490_v0 }
 0x218   :  { %1161 = vmatpush3.msra.mxu0 %v547_v23  ;;  %1194 = vmatpush3.msra.mxu1 %v644_v38 }
 0x219   :  { %1162 = vmatprep.subr.mxu0 %v1490_v0  ;;  %1195 = vmatprep.subr.mxu1 %v1490_v0 }
 0x21a   :  { %1163 = vmatpush3.msra.mxu0 %v546_v24  ;;  %1196 = vmatpush3.msra.mxu1 %v643_v39 }
 0x21b   :  { %1164 = vmatprep.subr.mxu0 %v1490_v0  ;;  %1197 = vmatprep.subr.mxu1 %v1490_v0 }
 0x21c   :  { %1165 = vmatpush3.msra.mxu0 %v545_v25  ;;  %1198 = vmatpush3.msra.mxu1 %v642_v40 }
 0x21d   :  { %1166 = vmatprep.subr.mxu0 %v1490_v0  ;;  %1199 = vmatprep.subr.mxu1 %v1490_v0 }
 0x21e   :  { %1167 = vmatpush3.msra.mxu0 %v544_v26  ;;  %1200 = vmatpush3.msra.mxu1 %v641_v41 }
 0x21f   :  { %1168 = vmatprep.subr.mxu0 %v1490_v0  ;;  %1201 = vmatprep.subr.mxu1 %v1490_v0 }
 0x220   :  { %1169 = vmatpush3.msra.mxu0 %v543_v27  ;;  %1202 = vmatpush3.msra.mxu1 %v640_v42 }
 0x221   :  { %1170 = vmatprep.subr.mxu0 %v1490_v0  ;;  %1203 = vmatprep.subr.mxu1 %v1490_v0 }
 0x222   :  { %1171 = vmatpush3.msra.mxu0 %v542_v28  ;;  %1204 = vmatpush3.msra.mxu1 %v639_v43 }
 0x223   :  { %1172 = vmatprep.subr.mxu0 %v1490_v0  ;;  %1205 = vmatprep.subr.mxu1 %v1490_v0 }
 0x224   :  { %1173 = vmatpush3.msra.mxu0 %v541_v29  ;;  %1206 = vmatpush3.msra.mxu1 %v638_v58 }
 0x225   :  { %1174 = vmatprep.subr.mxu0 %v1490_v0  ;;  %1207 = vmatprep.subr.mxu1 %v1490_v0 }
 0x226   :  { %1175 = vmatpush3.msra.mxu0 %v540_v30  ;;  %1208 = vmatpush3.msra.mxu1 %v637_v59 }
 0x227   :  { %1214 = vmatprep.subr.mxu0 %v1490_v0  ;;  %1209 = vmatprep.subr.mxu1 %v1490_v0 }
 0x228   :  { %1210 = vmatpush3.msra.mxu1 %v636_v60 }
 0x2c7   :  { %v435_v46 = vpop.f32.mrf.mxu0  ;;  %v528_v47 = vpop.f32.mrf.mxu1 }
 0x2c8   :  { %v436_v48 = vadd.f32 %v879_v44, %v435_v46  ;;  %v529_v49 = vadd.f32 %v880_v45, %v528_v47 }
 0x2c9   :  { %v1108_v50 = vpop.f32.mrf.mxu0  ;;  %v1143_v51 = vpop.f32.mrf.mxu1 }
 0x2ca   :  { %532 = vst [vmem:[#allocation15] sm:$0xff] %v436_v48  ;;  %533 = vst [vmem:[#allocation17] sm:$0xff] %v529_v49  ;;  %v535_v52 = vmul.f32 0.5, %v529_v49 }
 0x2cc   :  { %v536_v53 = vmul.f32 1.442695, %v535_v52 }
 0x2ce   :  { %1263 = vpow2.f32 %v536_v53 }
 0x2db   :  { %v1264_v55 = vpop.eup %1263 }
 0x2dc   :  { %v538_v56 = vmul.f32 %v1264_v55, %v534_v54 }
 0x2de   :  { %v539_v57 = vadd.f32 %v538_v56, %v436_v48 }
 0x2e0   :  { %1177 = vmatmul.mubr.f32.vlgmr.msra.gmra.mxu0 %v539_v57 }
 0x2e1   :  { %1246 = vmatprep.mubr.msk.f32.mxu0 %vm1491_vm0, %v1490_v0  ;;  %1215 = vmatpush3.msra.mxu0 %v747_v61 }
 0x2e2   :  { %1216 = vmatprep.subr.mxu0 %v1490_v0 }
 0x2e3   :  { %1217 = vmatpush3.msra.mxu0 %v746_v62 }
 0x2e4   :  { %1218 = vmatprep.subr.mxu0 %v1490_v0 }
 0x2e5   :  { %1219 = vmatpush3.msra.mxu0 %v745_v63 }
 0x2e6   :  { %1220 = vmatprep.subr.mxu0 %v1490_v0 }
 0x2e7   :  { %1221 = vmatpush3.msra.mxu0 %v744_v1 }
 0x2e8   :  { %1222 = vmatprep.subr.mxu0 %v1490_v0 }
 0x2e9   :  { %1223 = vmatpush3.msra.mxu0 %v743_v2 }
 0x2ea   :  { %1224 = vmatprep.subr.mxu0 %v1490_v0 }
 0x2eb   :  { %1225 = vmatpush3.msra.mxu0 %v742_v3 }
 0x2ec   :  { %1226 = vmatprep.subr.mxu0 %v1490_v0 }
 0x2ed   :  { %1227 = vmatpush3.msra.mxu0 %v741_v4 }
 0x2ee   :  { %1228 = vmatprep.subr.mxu0 %v1490_v0 }
 0x2ef   :  { %1229 = vmatpush3.msra.mxu0 %v740_v5 }
 0x2f0   :  { %1230 = vmatprep.subr.mxu0 %v1490_v0 }
 0x2f1   :  { %1231 = vmatpush3.msra.mxu0 %v739_v6 }
 0x2f2   :  { %1232 = vmatprep.subr.mxu0 %v1490_v0 }
 0x2f3   :  { %1233 = vmatpush3.msra.mxu0 %v738_v7 }
 0x2f4   :  { %1234 = vmatprep.subr.mxu0 %v1490_v0 }
 0x2f5   :  { %1235 = vmatpush3.msra.mxu0 %v737_v8 }
 0x2f6   :  { %1236 = vmatprep.subr.mxu0 %v1490_v0 }
 0x2f7   :  { %1237 = vmatpush3.msra.mxu0 %v736_v9 }
 0x2f8   :  { %1238 = vmatprep.subr.mxu0 %v1490_v0 }
 0x2f9   :  { %1239 = vmatpush3.msra.mxu0 %v735_v10 }
 0x2fa   :  { %1240 = vmatprep.subr.mxu0 %v1490_v0 }
 0x2fb   :  { %1241 = vmatpush3.msra.mxu0 %v734_v17 }
 0x2fc   :  { %1242 = vmatprep.subr.mxu0 %v1490_v0 }
 0x2fd   :  { %1243 = vmatpush3.msra.mxu0 %v733_v18 }
 0x2fe   :  { %1244 = vmatprep.subr.mxu0 %v1490_v0 }
 0x2ff   :  { %1245 = vmatpush3.msra.mxu0 %v732_v19 }
 0x3a0   :  { %v629_v12 = vpop.f32.mrf.mxu0 }
 0x3a1   :  { %v630_v13 = vadd.f32 %v881_v11, %v629_v12 }
 0x3a2   :  { %v1178_v14 = vpop.f32.mrf.mxu0 }
 0x3a3   :  { %vm633_vm3 = vcmp.ge.f32.partialorder %v630_v13, 0.0  ;;  %v634_v15 = vmul.f32 0.01, %v630_v13 }
 0x3a5   :  { %v635_v16 = vsel %vm633_vm3, %v630_v13, %v634_v15 }
 0x3a6   :  { %1212 = vmatmul.mubr.f32.vlgmr.msra.gmra.mxu1 %v635_v16 }
 0x466   :  { %v725_v21 = vpop.f32.mrf.mxu1 }
 0x467   :  { %v726_v22 = vadd.f32 %v882_v20, %v725_v21 }
 0x468   :  { %v1213_v23 = vpop.f32.mrf.mxu1 }
 0x469   :  { %vm729_vm4 = vcmp.ge.f32.partialorder %v726_v22, 0.0  ;;  %v730_v24 = vmul.f32 0.01, %v726_v22 }
 0x46b   :  { %v731_v25 = vsel %vm729_vm4, %v726_v22, %v730_v24 }
 0x46c   :  { %1247 = vmatmul.mubr.f32.vlgmr.msra.gmra.mxu0 %v731_v25 }
 0x46d   :  { %1420 = shalt.err (!%p1417_p11)
}
 0x46e   :  { %851 = dma.vmem_to_hbm [thread:$0]  %s849_s27, 128, %s1811_s17, [#allocation16]  }
 0x46f   :  { %s1493_s13 = smov [#allocation17]  }
 0x470   :  { %s858_s8 = sshll.u32 %s1493_s13, 4  ;;  %s859_s8 = int_to_ptr.vmem [resolvable:$true] %s858_s8 }
 0x471   :  { %s1429_s6 = scalar_lea.vmem %s859_s8, 128  ;;  %p1434_p13 = scmp.lt.s32.totalorder %s859_s8, %s859_s8 }
 0x472   :  { %p1430_p12 = scmp.ne.s32.totalorder %s859_s8, %s1429_s6  ;;  %p1435_p0 = scmp.lt.s32.totalorder %s1429_s6, %s1429_s6 }
 0x474   :  { %p1436_p1 = por %p1435_p0, %p1434_p13 }
 0x476   :  { %p1437_p2 = pnand %p1436_p1, %p1430_p12 }
 0x478   :  { %1440 = shalt.err (!%p1437_p2)
}
 0x479   :  { %861 = dma.vmem_to_hbm [thread:$0]  %s859_s8, 128, %s1812_s18, [#allocation16]   ;;  %v883_v0 = vld [vmem:[%s1809_s15] ss:$0 sm:$0xff] }
 0x47a   :  { %s1494_s17 = smov [#allocation14]  }
 0x47b   :  { %s838_s1 = sshll.u32 %s1494_s17, 4  ;;  %s839_s1 = int_to_ptr.vmem [resolvable:$true] %s838_s1 }
 0x47c   :  { %s1449_s0 = scalar_lea.vmem %s839_s1, 128  ;;  %p1454_p4 = scmp.lt.s32.totalorder %s839_s1, %s839_s1 }
 0x47d   :  { %p1450_p3 = scmp.ne.s32.totalorder %s839_s1, %s1449_s0  ;;  %p1455_p5 = scmp.lt.s32.totalorder %s1449_s0, %s1449_s0 }
 0x47f   :  { %p1456_p6 = por %p1455_p5, %p1454_p4 }
 0x481   :  { %p1457_p7 = pnand %p1456_p6, %p1450_p3 }
 0x52c   :  { %v821_v26 = vpop.f32.mrf.mxu0 }
 0x52d   :  { %v822_v27 = vadd.f32 %v883_v0, %v821_v26 }
 0x52e   :  { %v1248_v28 = vpop.f32.mrf.mxu0 }
 0x52f   :  { %v884_v29 = vmul.f32 -1.442695, %v822_v27 }
 0x531   :  { %1265 = vpow2.f32 %v884_v29 }
 0x53e   :  { %v1266_v30 = vpop.eup %1265 }
 0x53f   :  { %v828_v31 = vadd.f32 1.0, %v1266_v30 }
 0x541   :  { %1267 = vrcp.f32 %v828_v31 }
 0x54e   :  { %v1268_v32 = vpop.eup %1267 }
 0x54f   :  { %831 = vst [vmem:[#allocation14] sm:$0xff] %v1268_v32 }
 0x550   :  { %1460 = shalt.err (!%p1457_p7)
}
 0x551   :  { %841 = dma.vmem_to_hbm [thread:$0]  %s839_s1, 128, %s1810_s16, [#allocation4]  }
 0x552   :  { %1477 = dma.done.wait [#allocation4], 128  }
 0x553   :  { %1478 = vsyncadd [#allocation4], 4294967168 }
 0x554   :  { %1479 = dma.done.wait [#allocation16], 256  }
 0x555   :  { %1480 = vsyncadd [#allocation16], 4294967040 }
 0x556   :  { %871 = vsyncpa [#allocation3], 1 }
 0x557   :  { %872 = vsyncpa [#allocation6], 1 }
 0x558   :  { %873 = vsyncpa [#allocation9], 1 }
 0x559   :  { %874 = vsyncpa [#allocation12], 1 }
 0x55a   :  { %875 = vsyncpa [#allocation4], 1 }
 0x55b   :  { %876 = vsyncpa [#allocation16], 1 }

</bundles_post_ra>
